<compile_context>
chip_gen: v7x
topology: tpu7x:2x2x1
jax: 0.10.0
libtpu: 0.0.40
codegen_flags: <defaults>
</compile_context>

<pallas_src>
import functools

import jax
import jax.numpy as jnp
from jax import lax
from jax.experimental import pallas as pl
from jax.experimental.pallas import tpu as pltpu

_EPS = 1e-7  # matches torch.tensor(1e-07) in the module


# ----------------------------------------------------------------------------
# Kernel
# ----------------------------------------------------------------------------
def _row_sum(t):
    """Per-row sum over the feature (lane) axis of a (tb, F) f32 tile.

    For wide, 128-aligned F, fold the 128-lane chunks with cheap VPU adds first
    so the cross-lane (XLU) reduction only runs over one 128-lane strip per row
    instead of the full F extent (keeps the kernel HBM-bound, not XLU-bound).
    """
    f = t.shape[-1]
    if f > 128 and f % 128 == 0 and (f // 128) <= 64:
        acc = t[:, 0:128]
        for j in range(1, f // 128):
            acc = acc + t[:, j * 128:(j + 1) * 128]
        t = acc
    return jnp.sum(t, axis=-1, keepdims=True)


def _bn_kernel(x_ref, gb_ref, o_ref, *, inv_b, eps):
    """x tile (tb, F); gb tile (tb, 2) = [gamma | beta]; out tile (tb, F)."""
    x = x_ref[...].astype(jnp.float32)                      # (tb, F)
    gamma = gb_ref[:, 0:1]                                  # (tb, 1)
    beta = gb_ref[:, 1:2]                                   # (tb, 1)

    scale = jnp.float32(inv_b)
    mean = _row_sum(x) * scale                              # (tb, 1)
    d = x - mean                                            # two-pass: no cancellation
    var = _row_sum(d * d) * scale                           # (tb, 1)
    shift = mean * lax.rsqrt(var + jnp.float32(eps))        # EUP rsqrt; shift = mean/std
    c = beta - shift * gamma                                # fold per-row constants
    o_ref[...] = (x * gamma + c).astype(o_ref.dtype)        # y = (x - shift)*gamma + beta


# ----------------------------------------------------------------------------
# Tile sizing (chip-aware)
# ----------------------------------------------------------------------------
def _vmem_capacity_bytes() -> int:
    """Physical VMEM per core; falls back to device_kind (v4/v5/v6: 128 MiB)."""
    try:
        info = pltpu.get_tpu_info()
        cap = getattr(info, "vmem_capacity_bytes", None)
        if cap:
            return int(cap)
    except Exception:
        pass
    try:
        kind = jax.devices()[0].device_kind.lower()
    except Exception:
        kind = ""
    if ("v7" in kind) or ("7x" in kind):
        return 64 * 1024 * 1024
    if any(tag in kind for tag in ("v4", "v5", "v6")):
        return 128 * 1024 * 1024
    return 64 * 1024 * 1024  # unknown: conservative


def _tiling_budget():
    cap = _vmem_capacity_bytes()
    cap = max(64 * 1024 * 1024, min(cap, 256 * 1024 * 1024))
    vmem_limit = (cap * 3) // 4          # scoped-VMEM limit handed to Mosaic
    budget = vmem_limit // 2             # headroom for compiler scratch / spills
    return budget, int(vmem_limit)


def _per_row_bytes(F, itemsize):
    """Estimated VMEM bytes per batch row, lane padding + double-buffering included."""
    fp = ((F + 127) // 128) * 128        # lane-padded feature width in VMEM
    io = 4 * fp * itemsize               # x input + y output, double-buffered
    f32_tmp = 2 * fp * 4                 # in-kernel f32 upcast / (x - mean) tile
    params = 2 * 128 * 4                 # (tb, 2) gamma/beta block, 2 buffers, lane-padded
    row_tmps = 6 * 128 * 4               # (tb, 1) per-row stat temps, lane-padded
    return io + f32_tmp + params + row_tmps


def _choose_batch_tile(B, per_row_bytes, budget, align):
    tb = budget // max(per_row_bytes, 1)
    if B >= 2 * align:
        # Keep >= 2 grid steps so both v7x TensorCores get work; free on 1-TC chips.
        half = -(-((B + 1) // 2) // align) * align
        tb = min(tb, half)
    tb = (tb // align) * align
    if tb < align:
        # TODO(synk): extremely wide F — add an F-axis ("arbitrary") grid with a
        # two-pass stats/normalize pipeline instead of one minimal-height tile.
        tb = align
    if tb >= B:
        tb = B
    return int(tb)


# ----------------------------------------------------------------------------
# Wrapper
# ----------------------------------------------------------------------------
def batch_norm1d(x, gamma, beta, *, eps=_EPS):
    """x: (B, F); gamma, beta: (B,). Returns (B, F) matching the PyTorch module."""
    B, F = x.shape
    itemsize = jnp.dtype(x.dtype).itemsize
    align = max(8, 32 // itemsize)                       # 8 f32, 16 bf16, 32 int8/fp8

    budget, vmem_limit = _tiling_budget()
    tb = _choose_batch_tile(B, _per_row_bytes(F, itemsize), budget, align)

    # Pack gamma/beta into one (B, 2) f32 array: a single lane-legal (tb, 2) block.
    gb = jnp.stack([gamma.astype(jnp.float32), beta.astype(jnp.float32)], axis=1)

    kern = functools.partial(_bn_kernel, inv_b=1.0 / B, eps=eps)
    return pl.pallas_call(
        kern,
        out_shape=jax.ShapeDtypeStruct((B, F), x.dtype),
        grid=(pl.cdiv(B, tb),),
        in_specs=[
            pl.BlockSpec((tb, F), lambda i: (i, 0)),
            pl.BlockSpec((tb, 2), lambda i: (i, 0)),
        ],
        out_specs=pl.BlockSpec((tb, F), lambda i: (i, 0)),
        compiler_params=pltpu.CompilerParams(
            dimension_semantics=("parallel",),
            vmem_limit_bytes=vmem_limit,
        ),
    )(x, gb)


# ----------------------------------------------------------------------------
# Pure-JAX reference (matches the PyTorch module exactly, quirks included)
# ----------------------------------------------------------------------------
def batch_norm1d_ref(x, gamma, beta, *, eps=_EPS):
    B, _ = x.shape
    mean = (1.0 / B) * x.sum(axis=1)
    var = (1.0 / B) * ((x - mean[:, None]) ** 2).sum(axis=1)
    z = x - mean[:, None] / jnp.sqrt(var + jnp.float32(eps))[:, None]
    return z * gamma[:, None] + beta[:, None]


if __name__ == "__main__":
    key = jax.random.PRNGKey(0)
    k1, k2, k3, k4, k5 = jax.random.split(key, 5)

    # --- shape implied by the module (batch_dim=8, features=32) ---
    B, F = 8, 32
    x = jax.random.normal(k1, (B, F), dtype=jnp.float32)
    gamma = jnp.ones((B,), dtype=jnp.float32)   # module __init__: ones
    beta = jnp.zeros((B,), dtype=jnp.float32)   # module __init__: zeros
    y = batch_norm1d(x, gamma, beta)
    jax.block_until_ready(y)
    assert jnp.allclose(y, batch_norm1d_ref(x, gamma, beta), atol=2e-5, rtol=2e-5), \
        "mismatch vs reference (B=8, F=32)"

    # --- multi-step batch grid (2 tiles of 8 rows) + non-trivial gamma/beta ---
    B2, F2 = 16, 128
    x2 = jax.random.normal(k2, (B2, F2), dtype=jnp.float32)
    gamma2 = jax.random.normal(k3, (B2,), dtype=jnp.float32)
    beta2 = jax.random.normal(k4, (B2,), dtype=jnp.float32)
    y2 = batch_norm1d(x2, gamma2, beta2)
    jax.block_until_ready(y2)
    assert jnp.allclose(y2, batch_norm1d_ref(x2, gamma2, beta2), atol=2e-5, rtol=2e-5), \
        "mismatch vs reference (B=16, F=128)"

    # --- partial trailing block (B=20, tb=16) + lane-folded reduction (F=256) ---
    B3, F3 = 20, 256
    x3 = jax.random.normal(k5, (B3, F3), dtype=jnp.float32) + 0.5
    gamma3 = jnp.ones((B3,), dtype=jnp.float32)
    beta3 = jnp.zeros((B3,), dtype=jnp.float32)
    y3 = batch_norm1d(x3, gamma3, beta3)
    jax.block_until_ready(y3)
    assert jnp.allclose(y3, batch_norm1d_ref(x3, gamma3, beta3), atol=2e-5, rtol=2e-5), \
        "mismatch vs reference (B=20, F=256)"

    print("KERNEL_OK")
</pallas_src>

<mosaic_0001>
module attributes {stable_mosaic.version = 11 : i64} {
  func.func @_bn_kernel(%arg0: i32, %arg1: memref<8x32xf32, #tpu.memory_space<vmem>>, %arg2: memref<8x2xf32, #tpu.memory_space<vmem>>, %arg3: memref<8x32xf32, #tpu.memory_space<vmem>>) attributes {dimension_semantics = [#tpu.dimension_semantics<parallel>], iteration_bounds = array<i64: 1>, scalar_prefetch = 0 : i64, scratch_operands = 0 : i64, tpu.core_type = #tpu.core_type<tc>, window_params = [{transform_indices = @transform_0, window_bounds = array<i64: 8, 32>}, {transform_indices = @transform_1, window_bounds = array<i64: 8, 2>}, {transform_indices = @transform_2, window_bounds = array<i64: 8, 32>}]} {
    %c0 = arith.constant 0 : index
    %c0_0 = arith.constant 0 : index
    %0 = vector.load %arg1[%c0, %c0_0] : memref<8x32xf32, #tpu.memory_space<vmem>>, vector<8x32xf32>
    %c0_1 = arith.constant 0 : index
    %c0_2 = arith.constant 0 : index
    %1 = vector.load %arg2[%c0_1, %c0_2] : memref<8x2xf32, #tpu.memory_space<vmem>>, vector<8x1xf32>
    %c0_3 = arith.constant 0 : index
    %c1 = arith.constant 1 : index
    %2 = vector.load %arg2[%c0_3, %c1] : memref<8x2xf32, #tpu.memory_space<vmem>>, vector<8x1xf32>
    %cst = arith.constant dense<0.000000e+00> : vector<8xf32>
    %3 = vector.multi_reduction <add>, %0, %cst [1] : vector<8x32xf32> to vector<8xf32>
    %4 = vector.shape_cast %3 : vector<8xf32> to vector<8x1xf32>
    %cst_4 = arith.constant 1.250000e-01 : f32
    %5 = vector.broadcast %cst_4 : f32 to vector<8x1xf32>
    %6 = arith.mulf %4, %5 : vector<8x1xf32>
    %7 = vector.broadcast %6 : vector<8x1xf32> to vector<8x32xf32>
    %8 = arith.subf %0, %7 : vector<8x32xf32>
    %9 = arith.mulf %8, %8 : vector<8x32xf32>
    %cst_5 = arith.constant dense<0.000000e+00> : vector<8xf32>
    %10 = vector.multi_reduction <add>, %9, %cst_5 [1] : vector<8x32xf32> to vector<8xf32>
    %11 = vector.shape_cast %10 : vector<8xf32> to vector<8x1xf32>
    %cst_6 = arith.constant 1.250000e-01 : f32
    %12 = vector.broadcast %cst_6 : f32 to vector<8x1xf32>
    %13 = arith.mulf %11, %12 : vector<8x1xf32>
    %cst_7 = arith.constant 1.000000e-07 : f32
    %14 = vector.broadcast %cst_7 : f32 to vector<8x1xf32>
    %15 = arith.addf %13, %14 : vector<8x1xf32>
    %16 = math.rsqrt %15 : vector<8x1xf32>
    %17 = arith.mulf %6, %16 : vector<8x1xf32>
    %18 = arith.mulf %17, %1 : vector<8x1xf32>
    %19 = arith.subf %2, %18 : vector<8x1xf32>
    %20 = vector.broadcast %1 : vector<8x1xf32> to vector<8x32xf32>
    %21 = arith.mulf %0, %20 : vector<8x32xf32>
    %22 = vector.broadcast %19 : vector<8x1xf32> to vector<8x32xf32>
    %23 = arith.addf %21, %22 : vector<8x32xf32>
    %c0_8 = arith.constant 0 : index
    %c0_9 = arith.constant 0 : index
    %24 = vector.load %arg3[%c0_8, %c0_9] : memref<8x32xf32, #tpu.memory_space<vmem>>, vector<8x32xf32>
    tpu.vector_store %arg3[%c0_8, %c0_9], %23 {strides = array<i32>} : memref<8x32xf32, #tpu.memory_space<vmem>>, vector<8x32xf32>,
    return
  }
  func.func @transform_0(%arg0: i32) -> (i32, i32) {
    %c0_i32 = arith.constant 0 : i32
    %c0_i32_0 = arith.constant 0 : i32
    return %arg0, %c0_i32 : i32, i32
  }
  func.func @transform_1(%arg0: i32) -> (i32, i32) {
    %c0_i32 = arith.constant 0 : i32
    %c0_i32_0 = arith.constant 0 : i32
    return %arg0, %c0_i32 : i32, i32
  }
  func.func @transform_2(%arg0: i32) -> (i32, i32) {
    %c0_i32 = arith.constant 0 : i32
    %c0_i32_0 = arith.constant 0 : i32
    return %arg0, %c0_i32 : i32, i32
  }
}

</mosaic_0001>

<bundles_post_ra>
// kernel: tpu_custom_call.1
= control target key start
LH: loop header
LB: loop body
LE: loop exit
PB: predicated region body
PF: predicated region fallthrough
CT: control target
= control target key end

     0   :  { %vm14_vm0 = vcmask 261120   ;;  %s133_s0 = inlined_call_operand.vmem [shape: f32[8,32], index: 0, kind: input, shape index: {}]   ;;  %s134_s1 = inlined_call_operand.vmem [shape: f32[8,2], index: 1, kind: input, shape index: {}]   ;;  %s135_s2 = inlined_call_operand.hbm [shape: f32[8,32], index: 2, kind: output, shape index: {}]  }
   0x1   :  { %v12_v0 = vld [vmem:[%s133_s0] sm:$0xff] }
   0x2   :  { %7 = vsyncpa [#allocation3], 0  ;;  %v15_v1 = vsel %vm14_vm0, %v12_v0, 0.0  ;;  %v93_v7 = vmov 0   ;;  %v94_v11 = vmov 1   ;;  %v13_v13 = vld [vmem:[%s134_s1] sm:$0xff] }
   0x3   :  { %16 = vadd.xlane.f32.xlu0 %v15_v1  ;;  %65 = vset.pattern.permute.xlu1 %v93_v7  ;;  %s95_s12 = smov 1   ;;  %s96_s13 = smov [#allocation2]  }
   0x4   :  { %66 = vset.pattern.permute.xlu0 %v94_v11  ;;  %s53_s14 = sshll.u32 %s96_s13, 4  ;;  %s54_s14 = int_to_ptr.vmem [resolvable:$true] %s53_s14 }
   0x5   :  { %s69_s15 = scalar_lea.vmem %s54_s14, 128  ;;  %p74_p1 = scmp.lt.s32.totalorder %s54_s14, %s54_s14 }
   0x6   :  { %p70_p0 = scmp.ne.s32.totalorder %s54_s14, %s69_s15  ;;  %p75_p2 = scmp.lt.s32.totalorder %s69_s15, %s69_s15 }
   0x8   :  { %p76_p3 = por %p75_p2, %p74_p1 }
   0xa   :  { %p77_p4 = pnand %p76_p3, %p70_p0 }
  0x90   :  { %v17_v2 = vpop.xlane.xlu0 %16 }
  0x91   :  { %v18_v3 = vmul.f32 0.125, %v17_v2 }
  0x93   :  { %v19_v4 = vsub.f32 %v12_v0, %v18_v3 }
  0x95   :  { %v20_v5 = vmul.f32 %v19_v4, %v19_v4 }
  0x97   :  { %v21_v6 = vsel %vm14_vm0, %v20_v5, 0.0 }
  0x98   :  { %22 = vadd.xlane.f32.xlu0 %v21_v6 }
 0x125   :  { %v23_v8 = vpop.xlane.xlu0 %22 }
 0x126   :  { %v24_v9 = vmul.f32 0.125, %v23_v8 }
 0x128   :  { %v25_v10 = vadd.f32 1e-07, %v24_v9 }
 0x12a   :  { %67 = vrsqrt.f32 %v25_v10 }
 0x134   :  { %v68_v12 = vpop.eup %67 }
 0x135   :  { %v27_v14 = vmul.f32 %v68_v12, %v18_v3 }
 0x137   :  { %v28_v15 = vmul.f32 %v27_v14, %v13_v13 }
 0x139   :  { %30 = vrot.lane.b32.xlu1 %v28_v15, %s95_s12 }
 0x13d   :  { %36 = vperm.xlu1 %65, %v13_v13  }
 0x1ab   :  { %v31_v16 = vpop.permute.xlu1 %30 }
 0x1ac   :  { %v33_v17 = vsub.f32 %v13_v13, %v31_v16 }
 0x1ae   :  { %42 = vperm.xlu0 %66, %v33_v17  }
 0x1bc   :  { %v37_v18 = vpop.permute.xlu1 %36 }
 0x1bd   :  { %v39_v19 = vmul.f32 %v37_v18, %v12_v0 }
 0x22d   :  { %v43_v20 = vpop.permute.xlu0 %42 }
 0x22e   :  { %v45_v21 = vadd.f32 %v43_v20, %v39_v19 }
 0x230   :  { %46 = vst.msk [vmem:[#allocation2] sm:$0xff] %vm14_vm0, %v45_v21 }
 0x231   :  { %80 = shalt.err (!%p77_p4)
}
 0x232   :  { %s81_s17 = scalar_lea.hbm %s135_s2, 128 }
 0x233   :  { %p82_p5 = scmp.ne.s32.totalorder %s135_s2, %s81_s17  ;;  %p85_p6 = scmp.lt.u32.totalorder %s81_s17, %s135_s2 }
 0x235   :  { %p87_p7 = pnand %p85_p6, %p82_p5 }
 0x237   :  { %90 = shalt.err (!%p87_p7)
}
 0x238   :  { %56 = dma.vmem_to_hbm [thread:$0]  %s54_s14, 128, %s135_s2, [#allocation3]  }
 0x239   :  { %91 = dma.done.wait [#allocation3], 128  }
 0x23a   :  { %92 = vsyncadd [#allocation3], 4294967168 }
 0x23b   :  { %60 = vsyncpa [#allocation3], 1 }

</bundles_post_ra>
